<compile_context>
chip_gen: v7x
topology: tpu7x:2x2x1
jax: 0.10.0
libtpu: 0.0.40
codegen_flags: <defaults>
</compile_context>

<pallas_src>
import jax
import jax.numpy as jnp
from jax.experimental import pallas as pl
from jax.experimental.pallas import tpu as pltpu

P_DROP = 0.3
HIDDEN = 128
IN_DIM = 4
OUT_DIM = 2
OUT_PAD = 128                                   # lane-dense output slab
_DROP_THRESH = int(P_DROP * (1 << 32))          # keep iff bits >= thresh  (P=0.7)


def _round_up(x, m):
    return ((x + m - 1) // m) * m


def _keep_mask(shape, seed_u32, salt):
    """Stateless per-element uint32 hash -> Bernoulli(keep=1-p) mask.

    Pure VPU integer ops (iota / mul / xor / shift): lowers on TPU Mosaic and
    in interpret mode, unlike the stateful pltpu PRNG primitives.
    """
    r = jax.lax.broadcasted_iota(jnp.uint32, shape, 0)
    c = jax.lax.broadcasted_iota(jnp.uint32, shape, 1)
    x = r * jnp.uint32(0x9E3779B1) + c * jnp.uint32(0x85EBCA77)
    x = x + seed_u32 + jnp.uint32(salt)
    # murmur3 fmix32 finalizer
    x = x ^ (x >> jnp.uint32(16))
    x = x * jnp.uint32(0x7FEB352D)
    x = x ^ (x >> jnp.uint32(15))
    x = x * jnp.uint32(0x846CA68B)
    x = x ^ (x >> jnp.uint32(16))
    return x >= jnp.uint32(_DROP_THRESH)


def qnet_kernel(seed_ref,                        # SMEM (1,) int32   (scalar prefetch)
                x_ref,                           # (TB, 4)      f32
                w1_ref, b1_ref,                  # (4, 128) f32, (1, 128) f32
                w2_ref, b2_ref,                  # (128, 128) bf16 (pre-scaled), (1, 128) f32
                w3_ref, b3_ref,                  # (128, 128) bf16 (pre-scaled, zero-padded), (1, 128) f32
                o_ref):                          # (TB, 128)    f32
    pid = pl.program_id(0)
    # Per-tile seed so every batch tile draws an independent dropout stream.
    seed = (seed_ref[0] + pid * jnp.int32(0x01000193)).astype(jnp.uint32)

    x = x_ref[...]                               # (TB, 4)

    # ---- fc1 on the VPU: K=4 contraction as 4 broadcast FMAs (skip the MXU) ----
    w1 = w1_ref[...]
    h = b1_ref[...] + x[:, 0:1] * w1[0:1, :]
    h = h + x[:, 1:2] * w1[1:2, :]
    h = h + x[:, 2:3] * w1[2:3, :]
    h = h + x[:, 3:4] * w1[3:4, :]
    h = jnp.maximum(h, 0.0)
    # dropout #1 (1/(1-p) scale is folded into w2)
    h = jnp.where(_keep_mask(h.shape, seed, 0x243F6A88), h, 0.0)

    # ---- fc2 on the MXU (bf16 operands, f32 accumulate) ----
    h2 = jnp.dot(h.astype(jnp.bfloat16), w2_ref[...],
                 preferred_element_type=jnp.float32) + b2_ref[...]
    h2 = jnp.maximum(h2, 0.0)
    # dropout #2 (1/(1-p) scale is folded into w3)
    h2 = jnp.where(_keep_mask(h2.shape, seed, 0x2B7E1516), h2, 0.0)

    # ---- fc3, head zero-padded to 128 output lanes for dense stores ----
    out = jnp.dot(h2.astype(jnp.bfloat16), w3_ref[...],
                  preferred_element_type=jnp.float32) + b3_ref[...]
    o_ref[...] = out.astype(o_ref.dtype)


def prepare_params(params):
    """One-time transform of torch-layout params into kernel layout.

    - weights stored as (in_features, out_features) so kernel computes x @ W + b
    - 1/(1-p) inverted-dropout scale folded into W2 and W3
    - W3/b3 zero-padded to 128 output lanes
    - W2/W3 cast to bf16 (f32 accumulation in the kernel)
    """
    w1, b1, w2, b2, w3, b3 = params
    inv_keep = 1.0 / (1.0 - P_DROP)

    w1p = w1.astype(jnp.float32)                              # (4, 128)
    b1p = b1.reshape(1, -1).astype(jnp.float32)               # (1, 128)
    w2p = (w2 * inv_keep).astype(jnp.bfloat16)                # (128, 128)
    b2p = b2.reshape(1, -1).astype(jnp.float32)               # (1, 128)
    w3p = jnp.zeros((HIDDEN, OUT_PAD), jnp.float32)
    w3p = w3p.at[:, :OUT_DIM].set(w3 * inv_keep).astype(jnp.bfloat16)
    b3p = jnp.zeros((1, OUT_PAD), jnp.float32)
    b3p = b3p.at[:, :OUT_DIM].set(b3.reshape(1, -1))
    return (w1p, b1p, w2p, b2p, w3p, b3p)


def qnet_forward(prepared, x, seed, *, block_b=512):
    """prepared = prepare_params(...); x: (B, 4) f32; seed: (1,) i32 (fresh per step)."""
    w1, b1, w2, b2, w3, b3 = prepared
    B = x.shape[0]

    # Batch tile: biggest that makes sense, rounded to the sublane granule (8).
    # Footprint at TB=512 (double-buffered x/out + resident weights) is well
    # under the scoped-VMEM default on v5e/v6e and v7x's 64 MiB.
    TB = min(block_b, _round_up(B, 8))
    Bp = _round_up(B, TB)
    if Bp != B:
        x = jnp.pad(x, ((0, Bp - B), (0, 0)))

    out = pl.pallas_call(
        qnet_kernel,
        out_shape=jax.ShapeDtypeStruct((Bp, OUT_PAD), jnp.float32),
        grid_spec=pltpu.PrefetchScalarGridSpec(
            num_scalar_prefetch=1,                       # seed -> SMEM
            grid=(Bp // TB,),
            in_specs=[
                pl.BlockSpec((TB, IN_DIM), lambda i, s: (i, 0)),      # x: tiled over batch
                pl.BlockSpec((IN_DIM, HIDDEN), lambda i, s: (0, 0)),  # weights resident
                pl.BlockSpec((1, HIDDEN), lambda i, s: (0, 0)),
                pl.BlockSpec((HIDDEN, HIDDEN), lambda i, s: (0, 0)),
                pl.BlockSpec((1, HIDDEN), lambda i, s: (0, 0)),
                pl.BlockSpec((HIDDEN, OUT_PAD), lambda i, s: (0, 0)),
                pl.BlockSpec((1, OUT_PAD), lambda i, s: (0, 0)),
            ],
            out_specs=pl.BlockSpec((TB, OUT_PAD), lambda i, s: (i, 0)),
        ),
        compiler_params=pltpu.CompilerParams(
            dimension_semantics=("parallel",),           # batch axis -> 2 TCs on v7x
        ),
    )(seed, x, w1, b1, w2, b2, w3, b3)

    return out[:B, :OUT_DIM]


def init_params(key):
    """Deterministic init mimicking torch.nn.Linear defaults U(-1/sqrt(fan_in), +)."""
    def linear(k, fan_in, fan_out):
        kw, kb = jax.random.split(k)
        bound = 1.0 / (fan_in ** 0.5)
        w = jax.random.uniform(kw, (fan_in, fan_out), jnp.float32, -bound, bound)
        b = jax.random.uniform(kb, (fan_out,), jnp.float32, -bound, bound)
        return w, b

    k1, k2, k3 = jax.random.split(key, 3)
    w1, b1 = linear(k1, IN_DIM, HIDDEN)
    w2, b2 = linear(k2, HIDDEN, HIDDEN)
    w3, b3 = linear(k3, HIDDEN, OUT_DIM)
    return (w1, b1, w2, b2, w3, b3)


if __name__ == "__main__":
    key = jax.random.PRNGKey(0)
    pkey, xkey = jax.random.split(key)

    params = init_params(pkey)
    prepared = prepare_params(params)

    # Small batch of CartPole states (batch=32, features=4).
    B = 32
    x = jax.random.normal(xkey, (B, IN_DIM), dtype=jnp.float32)
    seed = jnp.array([1234], dtype=jnp.int32)   # pass a fresh seed every step in training

    out = qnet_forward(prepared, x, seed)
    out = jax.block_until_ready(out)

    assert out.shape == (B, OUT_DIM) and out.dtype == jnp.float32
    assert bool(jnp.all(jnp.isfinite(out)))
    print("KERNEL_OK")
</pallas_src>

<mosaic_0001>
module attributes {stable_mosaic.version = 11 : i64} {
  func.func @qnet_kernel(%arg0: i32, %arg1: memref<1xi32, #tpu.memory_space<smem>>, %arg2: memref<32x4xf32, #tpu.memory_space<vmem>>, %arg3: memref<4x128xf32, #tpu.memory_space<vmem>>, %arg4: memref<1x128xf32, #tpu.memory_space<vmem>>, %arg5: memref<128x128xbf16, #tpu.memory_space<vmem>>, %arg6: memref<1x128xf32, #tpu.memory_space<vmem>>, %arg7: memref<128x128xbf16, #tpu.memory_space<vmem>>, %arg8: memref<1x128xf32, #tpu.memory_space<vmem>>, %arg9: memref<32x128xf32, #tpu.memory_space<vmem>>) attributes {dimension_semantics = [#tpu.dimension_semantics<parallel>], iteration_bounds = array<i64: 1>, scalar_prefetch = 1 : i64, scratch_operands = 0 : i64, tpu.core_type = #tpu.core_type<tc>, window_params = [{transform_indices = @transform_0, window_bounds = array<i64: 32, 4>}, {pipeline_mode = #tpu.pipeline_mode<synchronous>, transform_indices = @transform_1, window_bounds = array<i64: 4, 128>}, {pipeline_mode = #tpu.pipeline_mode<synchronous>, transform_indices = @transform_2, window_bounds = array<i64: 1, 128>}, {pipeline_mode = #tpu.pipeline_mode<synchronous>, transform_indices = @transform_3, window_bounds = array<i64: 128, 128>}, {pipeline_mode = #tpu.pipeline_mode<synchronous>, transform_indices = @transform_4, window_bounds = array<i64: 1, 128>}, {pipeline_mode = #tpu.pipeline_mode<synchronous>, transform_indices = @transform_5, window_bounds = array<i64: 128, 128>}, {pipeline_mode = #tpu.pipeline_mode<synchronous>, transform_indices = @transform_6, window_bounds = array<i64: 1, 128>}, {transform_indices = @transform_7, window_bounds = array<i64: 32, 128>}]} {
    %c0 = arith.constant 0 : index
    %0 = memref.load %arg1[%c0] : memref<1xi32, #tpu.memory_space<smem>>
    %c16777619_i32 = arith.constant 16777619 : i32
    %1 = arith.muli %arg0, %c16777619_i32 : i32
    %2 = arith.addi %0, %1 : i32
    %c0_0 = arith.constant 0 : index
    %c0_1 = arith.constant 0 : index
    %3 = vector.load %arg2[%c0_0, %c0_1] : memref<32x4xf32, #tpu.memory_space<vmem>>, vector<32x4xf32>
    %c0_2 = arith.constant 0 : index
    %c0_3 = arith.constant 0 : index
    %4 = vector.load %arg3[%c0_2, %c0_3] : memref<4x128xf32, #tpu.memory_space<vmem>>, vector<4x128xf32>
    %c0_4 = arith.constant 0 : index
    %c0_5 = arith.constant 0 : index
    %5 = vector.load %arg4[%c0_4, %c0_5] : memref<1x128xf32, #tpu.memory_space<vmem>>, vector<1x128xf32>
    %6 = vector.extract_strided_slice %3 {offsets = [0, 0], sizes = [32, 1], strides = [1, 1]} : vector<32x4xf32> to vector<32x1xf32>
    %7 = vector.extract_strided_slice %4 {offsets = [0, 0], sizes = [1, 128], strides = [1, 1]} : vector<4x128xf32> to vector<1x128xf32>
    %8 = vector.broadcast %6 : vector<32x1xf32> to vector<32x128xf32>
    %9 = vector.broadcast %7 : vector<1x128xf32> to vector<32x128xf32>
    %10 = arith.mulf %8, %9 : vector<32x128xf32>
    %11 = vector.broadcast %5 : vector<1x128xf32> to vector<32x128xf32>
    %12 = arith.addf %11, %10 : vector<32x128xf32>
    %13 = vector.extract_strided_slice %3 {offsets = [0, 1], sizes = [32, 1], strides = [1, 1]} : vector<32x4xf32> to vector<32x1xf32>
    %14 = vector.extract_strided_slice %4 {offsets = [1, 0], sizes = [1, 128], strides = [1, 1]} : vector<4x128xf32> to vector<1x128xf32>
    %15 = vector.broadcast %13 : vector<32x1xf32> to vector<32x128xf32>
    %16 = vector.broadcast %14 : vector<1x128xf32> to vector<32x128xf32>
    %17 = arith.mulf %15, %16 : vector<32x128xf32>
    %18 = arith.addf %12, %17 : vector<32x128xf32>
    %19 = vector.extract_strided_slice %3 {offsets = [0, 2], sizes = [32, 1], strides = [1, 1]} : vector<32x4xf32> to vector<32x1xf32>
    %20 = vector.extract_strided_slice %4 {offsets = [2, 0], sizes = [1, 128], strides = [1, 1]} : vector<4x128xf32> to vector<1x128xf32>
    %21 = vector.broadcast %19 : vector<32x1xf32> to vector<32x128xf32>
    %22 = vector.broadcast %20 : vector<1x128xf32> to vector<32x128xf32>
    %23 = arith.mulf %21, %22 : vector<32x128xf32>
    %24 = arith.addf %18, %23 : vector<32x128xf32>
    %25 = vector.extract_strided_slice %3 {offsets = [0, 3], sizes = [32, 1], strides = [1, 1]} : vector<32x4xf32> to vector<32x1xf32>
    %26 = vector.extract_strided_slice %4 {offsets = [3, 0], sizes = [1, 128], strides = [1, 1]} : vector<4x128xf32> to vector<1x128xf32>
    %27 = vector.broadcast %25 : vector<32x1xf32> to vector<32x128xf32>
    %28 = vector.broadcast %26 : vector<1x128xf32> to vector<32x128xf32>
    %29 = arith.mulf %27, %28 : vector<32x128xf32>
    %30 = arith.addf %24, %29 : vector<32x128xf32>
    %cst = arith.constant 0.000000e+00 : f32
    %31 = vector.broadcast %cst : f32 to vector<32x128xf32>
    %32 = arith.maximumf %30, %31 : vector<32x128xf32>
    %33 = tpu.iota {dimensions = array<i32: 0>} : vector<32x128xi32>
    %34 = tpu.iota {dimensions = array<i32: 1>} : vector<32x128xi32>
    %c-1640531535_i32 = arith.constant -1640531535 : i32
    %35 = vector.broadcast %c-1640531535_i32 : i32 to vector<32x128xi32>
    %36 = arith.muli %33, %35 : vector<32x128xi32>
    %c-2048144777_i32 = arith.constant -2048144777 : i32
    %37 = vector.broadcast %c-2048144777_i32 : i32 to vector<32x128xi32>
    %38 = arith.muli %34, %37 : vector<32x128xi32>
    %39 = arith.addi %36, %38 : vector<32x128xi32>
    %40 = vector.broadcast %2 : i32 to vector<32x128xi32>
    %41 = arith.addi %39, %40 : vector<32x128xi32>
    %c608135816_i32 = arith.constant 608135816 : i32
    %42 = vector.broadcast %c608135816_i32 : i32 to vector<32x128xi32>
    %43 = arith.addi %41, %42 : vector<32x128xi32>
    %c16_i32 = arith.constant 16 : i32
    %44 = vector.broadcast %c16_i32 : i32 to vector<32x128xi32>
    %45 = arith.shrui %43, %44 : vector<32x128xi32>
    %46 = arith.xori %43, %45 : vector<32x128xi32>
    %c2146121005_i32 = arith.constant 2146121005 : i32
    %47 = vector.broadcast %c2146121005_i32 : i32 to vector<32x128xi32>
    %48 = arith.muli %46, %47 : vector<32x128xi32>
    %c15_i32 = arith.constant 15 : i32
    %49 = vector.broadcast %c15_i32 : i32 to vector<32x128xi32>
    %50 = arith.shrui %48, %49 : vector<32x128xi32>
    %51 = arith.xori %48, %50 : vector<32x128xi32>
    %c-2073254261_i32 = arith.constant -2073254261 : i32
    %52 = vector.broadcast %c-2073254261_i32 : i32 to vector<32x128xi32>
    %53 = arith.muli %51, %52 : vector<32x128xi32>
    %c16_i32_6 = arith.constant 16 : i32
    %54 = vector.broadcast %c16_i32_6 : i32 to vector<32x128xi32>
    %55 = arith.shrui %53, %54 : vector<32x128xi32>
    %56 = arith.xori %53, %55 : vector<32x128xi32>
    %c1288490188_i32 = arith.constant 1288490188 : i32
    %57 = vector.broadcast %c1288490188_i32 : i32 to vector<32x128xi32>
    %58 = arith.cmpi uge, %56, %57 : vector<32x128xi32>
    %cst_7 = arith.constant 0.000000e+00 : f32
    %59 = vector.broadcast %cst_7 : f32 to vector<32x128xf32>
    %60 = arith.select %58, %32, %59 : vector<32x128xi1>, vector<32x128xf32>
    %61 = arith.truncf %60 : vector<32x128xf32> to vector<32x128xbf16>
    %c0_8 = arith.constant 0 : index
    %c0_9 = arith.constant 0 : index
    %62 = vector.load %arg5[%c0_8, %c0_9] : memref<128x128xbf16, #tpu.memory_space<vmem>>, vector<128x128xbf16>
    %cst_10 = arith.constant dense<0.000000e+00> : vector<32x128xf32>
    %63 = tpu.matmul %61, %62, %cst_10 {dimension_numbers = #tpu.dot_dimension_numbers<[1], [0], [0], [1], [0, 0, 1, 1], [], []>} : vector<32x128xbf16>, vector<128x128xbf16>, vector<32x128xf32> -> vector<32x128xf32>
    %c0_11 = arith.constant 0 : index
    %c0_12 = arith.constant 0 : index
    %64 = vector.load %arg6[%c0_11, %c0_12] : memref<1x128xf32, #tpu.memory_space<vmem>>, vector<1x128xf32>
    %65 = vector.broadcast %64 : vector<1x128xf32> to vector<32x128xf32>
    %66 = arith.addf %63, %65 : vector<32x128xf32>
    %cst_13 = arith.constant 0.000000e+00 : f32
    %67 = vector.broadcast %cst_13 : f32 to vector<32x128xf32>
    %68 = arith.maximumf %66, %67 : vector<32x128xf32>
    %69 = tpu.iota {dimensions = array<i32: 0>} : vector<32x128xi32>
    %70 = tpu.iota {dimensions = array<i32: 1>} : vector<32x128xi32>
    %c-1640531535_i32_14 = arith.constant -1640531535 : i32
    %71 = vector.broadcast %c-1640531535_i32_14 : i32 to vector<32x128xi32>
    %72 = arith.muli %69, %71 : vector<32x128xi32>
    %c-2048144777_i32_15 = arith.constant -2048144777 : i32
    %73 = vector.broadcast %c-2048144777_i32_15 : i32 to vector<32x128xi32>
    %74 = arith.muli %70, %73 : vector<32x128xi32>
    %75 = arith.addi %72, %74 : vector<32x128xi32>
    %76 = vector.broadcast %2 : i32 to vector<32x128xi32>
    %77 = arith.addi %75, %76 : vector<32x128xi32>
    %c729683222_i32 = arith.constant 729683222 : i32
    %78 = vector.broadcast %c729683222_i32 : i32 to vector<32x128xi32>
    %79 = arith.addi %77, %78 : vector<32x128xi32>
    %c16_i32_16 = arith.constant 16 : i32
    %80 = vector.broadcast %c16_i32_16 : i32 to vector<32x128xi32>
    %81 = arith.shrui %79, %80 : vector<32x128xi32>
    %82 = arith.xori %79, %81 : vector<32x128xi32>
    %c2146121005_i32_17 = arith.constant 2146121005 : i32
    %83 = vector.broadcast %c2146121005_i32_17 : i32 to vector<32x128xi32>
    %84 = arith.muli %82, %83 : vector<32x128xi32>
    %c15_i32_18 = arith.constant 15 : i32
    %85 = vector.broadcast %c15_i32_18 : i32 to vector<32x128xi32>
    %86 = arith.shrui %84, %85 : vector<32x128xi32>
    %87 = arith.xori %84, %86 : vector<32x128xi32>
    %c-2073254261_i32_19 = arith.constant -2073254261 : i32
    %88 = vector.broadcast %c-2073254261_i32_19 : i32 to vector<32x128xi32>
    %89 = arith.muli %87, %88 : vector<32x128xi32>
    %c16_i32_20 = arith.constant 16 : i32
    %90 = vector.broadcast %c16_i32_20 : i32 to vector<32x128xi32>
    %91 = arith.shrui %89, %90 : vector<32x128xi32>
    %92 = arith.xori %89, %91 : vector<32x128xi32>
    %c1288490188_i32_21 = arith.constant 1288490188 : i32
    %93 = vector.broadcast %c1288490188_i32_21 : i32 to vector<32x128xi32>
    %94 = arith.cmpi uge, %92, %93 : vector<32x128xi32>
    %cst_22 = arith.constant 0.000000e+00 : f32
    %95 = vector.broadcast %cst_22 : f32 to vector<32x128xf32>
    %96 = arith.select %94, %68, %95 : vector<32x128xi1>, vector<32x128xf32>
    %97 = arith.truncf %96 : vector<32x128xf32> to vector<32x128xbf16>
    %c0_23 = arith.constant 0 : index
    %c0_24 = arith.constant 0 : index
    %98 = vector.load %arg7[%c0_23, %c0_24] : memref<128x128xbf16, #tpu.memory_space<vmem>>, vector<128x128xbf16>
    %cst_25 = arith.constant dense<0.000000e+00> : vector<32x128xf32>
    %99 = tpu.matmul %97, %98, %cst_25 {dimension_numbers = #tpu.dot_dimension_numbers<[1], [0], [0], [1], [0, 0, 1, 1], [], []>} : vector<32x128xbf16>, vector<128x128xbf16>, vector<32x128xf32> -> vector<32x128xf32>
    %c0_26 = arith.constant 0 : index
    %c0_27 = arith.constant 0 : index
    %100 = vector.load %arg8[%c0_26, %c0_27] : memref<1x128xf32, #tpu.memory_space<vmem>>, vector<1x128xf32>
    %101 = vector.broadcast %100 : vector<1x128xf32> to vector<32x128xf32>
    %102 = arith.addf %99, %101 : vector<32x128xf32>
    %c0_28 = arith.constant 0 : index
    %c0_29 = arith.constant 0 : index
    %103 = vector.load %arg9[%c0_28, %c0_29] : memref<32x128xf32, #tpu.memory_space<vmem>>, vector<32x128xf32>
    tpu.vector_store %arg9[%c0_28, %c0_29], %102 {strides = array<i32>} : memref<32x128xf32, #tpu.memory_space<vmem>>, vector<32x128xf32>,
    return
  }
  func.func @transform_0(%arg0: i32, %arg1: memref<1xi32, #tpu.memory_space<smem>>) -> (i32, i32) {
    %c0_i32 = arith.constant 0 : i32
    %c0_i32_0 = arith.constant 0 : i32
    return %arg0, %c0_i32 : i32, i32
  }
  func.func @transform_1(%arg0: i32, %arg1: memref<1xi32, #tpu.memory_space<smem>>) -> (i32, i32) {
    %c0_i32 = arith.constant 0 : i32
    %c0_i32_0 = arith.constant 0 : i32
    %c0_i32_1 = arith.constant 0 : i32
    return %c0_i32, %c0_i32_0 : i32, i32
  }
  func.func @transform_2(%arg0: i32, %arg1: memref<1xi32, #tpu.memory_space<smem>>) -> (i32, i32) {
    %c0_i32 = arith.constant 0 : i32
    %c0_i32_0 = arith.constant 0 : i32
    %c0_i32_1 = arith.constant 0 : i32
    return %c0_i32, %c0_i32_0 : i32, i32
  }
  func.func @transform_3(%arg0: i32, %arg1: memref<1xi32, #tpu.memory_space<smem>>) -> (i32, i32) {
    %c0_i32 = arith.constant 0 : i32
    %c0_i32_0 = arith.constant 0 : i32
    %c0_i32_1 = arith.constant 0 : i32
    return %c0_i32, %c0_i32_0 : i32, i32
  }
  func.func @transform_4(%arg0: i32, %arg1: memref<1xi32, #tpu.memory_space<smem>>) -> (i32, i32) {
    %c0_i32 = arith.constant 0 : i32
    %c0_i32_0 = arith.constant 0 : i32
    %c0_i32_1 = arith.constant 0 : i32
    return %c0_i32, %c0_i32_0 : i32, i32
  }
  func.func @transform_5(%arg0: i32, %arg1: memref<1xi32, #tpu.memory_space<smem>>) -> (i32, i32) {
    %c0_i32 = arith.constant 0 : i32
    %c0_i32_0 = arith.constant 0 : i32
    %c0_i32_1 = arith.constant 0 : i32
    return %c0_i32, %c0_i32_0 : i32, i32
  }
  func.func @transform_6(%arg0: i32, %arg1: memref<1xi32, #tpu.memory_space<smem>>) -> (i32, i32) {
    %c0_i32 = arith.constant 0 : i32
    %c0_i32_0 = arith.constant 0 : i32
    %c0_i32_1 = arith.constant 0 : i32
    return %c0_i32, %c0_i32_0 : i32, i32
  }
  func.func @transform_7(%arg0: i32, %arg1: memref<1xi32, #tpu.memory_space<smem>>) -> (i32, i32) {
    %c0_i32 = arith.constant 0 : i32
    %c0_i32_0 = arith.constant 0 : i32
    return %arg0, %c0_i32 : i32, i32
  }
}

</mosaic_0001>

<bundles_post_ra>
// kernel: tpu_custom_call.1
= control target key start
LH: loop header
LB: loop body
LE: loop exit
PB: predicated region body
PF: predicated region fallthrough
CT: control target
= control target key end

     0   :  { %14 = vsyncpa [#allocation5], 0  ;;  %s915_s0 = inlined_call_operand.<no memory space> [shape: s32[1], index: 0, kind: input, shape index: {}]   ;;  %s916_s1 = inlined_call_operand.vmem [shape: f32[32,4], index: 1, kind: input, shape index: {}]   ;;  %s917_s2 = inlined_call_operand.vmem [shape: f32[4,128], index: 2, kind: input, shape index: {}]   ;;  %s918_s3 = inlined_call_operand.vmem [shape: f32[1,128], index: 3, kind: input, shape index: {}]   ;;  %s919_s4 = inlined_call_operand.hbm [shape: bf16[128,128], index: 4, kind: input, shape index: {}]   ;;  %s920_s5 = inlined_call_operand.vmem [shape: f32[1,128], index: 5, kind: input, shape index: {}]   ;;  %s921_s6 = inlined_call_operand.hbm [shape: bf16[128,128], index: 6, kind: input, shape index: {}]   ;;  %s922_s7 = inlined_call_operand.vmem [shape: f32[1,128], index: 7, kind: input, shape index: {}]   ;;  %s923_s8 = inlined_call_operand.hbm [shape: f32[32,128], index: 8, kind: output, shape index: {}]  }
   0x1   :  { %15 = vsyncpa [#allocation8], 0 }
   0x2   :  { %16 = vsyncpa [#allocation6], 0  ;;  %s770_s27 = smov [#allocation4]   ;;  %s698_s9 = scalar_lea.hbm %s919_s4, 1024 }
   0x3   :  { %s28_s28 = sshll.u32 %s770_s27, 4  ;;  %p699_p0 = scmp.ne.s32.totalorder %s919_s4, %s698_s9  ;;  %s29_s28 = int_to_ptr.vmem [resolvable:$true] %s28_s28 }
   0x4   :  { %p702_p1 = scmp.lt.u32.totalorder %s698_s9, %s919_s4 }
   0x6   :  { %p704_p2 = pnand %p702_p1, %p699_p0 }
   0x8   :  { %707 = shalt.err (!%p704_p2)
}
   0x9   :  { %s708_s14 = scalar_lea.vmem %s29_s28, 1024  ;;  %p713_p4 = scmp.lt.s32.totalorder %s29_s28, %s29_s28 }
   0xa   :  { %p709_p3 = scmp.ne.s32.totalorder %s29_s28, %s708_s14  ;;  %p714_p5 = scmp.lt.s32.totalorder %s708_s14, %s708_s14 }
   0xc   :  { %p715_p6 = por %p714_p5, %p713_p4 }
   0xe   :  { %p716_p7 = pnand %p715_p6, %p709_p3 }
  0x10   :  { %719 = shalt.err (!%p716_p7)
}
  0x11   :  { %s771_s15 = smov 64   ;;  %s772_s16 = smov 4  }
  0x12   :  { %34 = dma.hbm_to_vmem [thread:$0]  %s919_s4, 1024, %s29_s28, [#allocation5], %s771_s15, %s771_s15, %s772_s16  }
  0x13   :  { %s773_s19 = smov [#allocation7]   ;;  %s720_s23 = scalar_lea.hbm %s921_s6, 1024 }
  0x14   :  { %s42_s20 = sshll.u32 %s773_s19, 4  ;;  %p721_p8 = scmp.ne.s32.totalorder %s921_s6, %s720_s23  ;;  %s43_s20 = int_to_ptr.vmem [resolvable:$true] %s42_s20 }
  0x15   :  { %p724_p9 = scmp.lt.u32.totalorder %s720_s23, %s921_s6 }
  0x17   :  { %p726_p10 = pnand %p724_p9, %p721_p8 }
  0x19   :  { %729 = shalt.err (!%p726_p10)
}
  0x1a   :  { %s730_s29 = scalar_lea.vmem %s43_s20, 1024  ;;  %p735_p12 = scmp.lt.s32.totalorder %s43_s20, %s43_s20 }
  0x1b   :  { %p731_p11 = scmp.ne.s32.totalorder %s43_s20, %s730_s29  ;;  %p736_p13 = scmp.lt.s32.totalorder %s730_s29, %s730_s29 }
  0x1d   :  { %p737_p0 = por %p736_p13, %p735_p12 }
  0x1f   :  { %p738_p1 = pnand %p737_p0, %p731_p11 }
  0x21   :  { %741 = shalt.err (!%p738_p1)
}
  0x22   :  { %48 = dma.hbm_to_vmem [thread:$0]  %s921_s6, 1024, %s43_s20, [#allocation8], %s771_s15, %s771_s15, %s772_s16  }
  0x23   :  { %764 = dma.done.wait [#allocation5], 1024  }
  0x24   :  { %765 = vsyncadd [#allocation5], 4294966272 }
  0x25   :  { %766 = dma.done.wait [#allocation8], 1024  }
  0x26   :  { %767 = vsyncadd [#allocation8], 4294966272  ;;  %v774_v0 = vmov 0   ;;  %v63_v1 = vld [vmem:[%s916_s1 + $0x10] sm:$0xff]  ;;  %v61_v2 = vld [vmem:[%s916_s1] sm:$0xff]  ;;  %v775_v5 = vmov 1   ;;  %v87_v22 = vlaneseq  ;;  %v209_v33 = vstv %s915_s0 }
  0x27   :  { %675 = vset.pattern.permute.xlu1 %v774_v0  ;;  %674 = vset.pattern.permute.xlu0 %v774_v0  ;;  %v64_v3 = vld [vmem:[%s916_s1 + $0x18] sm:$0xff]  ;;  %v62_v4 = vld [vmem:[%s916_s1 + $0x8] sm:$0xff]  ;;  %v682_v6 = vld [vmem:[#allocation4] sm:$0xff]   ;;  %v776_v8 = vmov 2   ;;  %v777_v11 = vmov 3   ;;  %s778_s20 = smov [#allocation9]  }
  0x28   :  { %79 = vperm.xlu1 %675, %v63_v1   ;;  %69 = vperm.xlu0 %674, %v61_v2   ;;  %v683_v7 = vld [vmem:[#allocation4 + $0x8] sm:$0xff]   ;;  %v684_v9 = vld [vmem:[#allocation4 + $0x10] sm:$0xff]   ;;  %v685_v10 = vld [vmem:[#allocation4 + $0x18] sm:$0xff]   ;;  %v862_v23 = vshrl.u32 %v87_v22, 7  ;;  %v199_v25 = vand.u32 127, %v87_v22  ;;  %s559_s21 = sshll.u32 %s778_s20, 4  ;;  %s560_s21 = int_to_ptr.vmem [resolvable:$true] %s559_s21 }
  0x29   :  { %623 = vmatprep.subr.bf16.mxu0 %v682_v6  ;;  %v686_v12 = vld [vmem:[#allocation4 + $0x20] sm:$0xff]   ;;  %v687_v13 = vld [vmem:[#allocation4 + $0x28] sm:$0xff]   ;;  %v688_v14 = vld [vmem:[#allocation4 + $0x30] sm:$0xff]   ;;  %s742_s22 = scalar_lea.vmem %s560_s21, 512  ;;  %p747_p3 = scmp.lt.s32.totalorder %s560_s21, %s560_s21 }
  0x2a   :  { %624 = vmatpush3.bf16.msra.mxu0 %v682_v6  ;;  %v689_v15 = vld [vmem:[#allocation4 + $0x38] sm:$0xff]   ;;  %v690_v16 = vld [vmem:[#allocation7] sm:$0xff]   ;;  %v691_v17 = vld [vmem:[#allocation7 + $0x8] sm:$0xff]   ;;  %v195_v24 = vadd.s32 8, %v862_v23  ;;  %v200_v26 = vmul.u32 2654435761, %v862_v23  ;;  %p743_p2 = scmp.ne.s32.totalorder %s560_s21, %s742_s22  ;;  %p748_p4 = scmp.lt.s32.totalorder %s742_s22, %s742_s22 }
  0x2b   :  { %625 = vmatprep.subr.bf16.mxu0 %v683_v7  ;;  %643 = vmatprep.subr.bf16.mxu1 %v690_v16  ;;  %v692_v18 = vld [vmem:[#allocation7 + $0x10] sm:$0xff]   ;;  %v693_v19 = vld [vmem:[#allocation7 + $0x18] sm:$0xff]   ;;  %v694_v20 = vld [vmem:[#allocation7 + $0x20] sm:$0xff]   ;;  %v204_v28 = vmul.u32 2246822519, %v199_v25  ;;  %v196_v29 = vadd.s32 16, %v862_v23 }
  0x2c   :  { %84 = vperm.xlu1 %675, %v64_v3   ;;  %74 = vperm.xlu0 %674, %v62_v4   ;;  %v695_v21 = vld [vmem:[#allocation7 + $0x28] sm:$0xff]   ;;  %v201_v27 = vmul.u32 2654435761, %v195_v24  ;;  %v197_v30 = vadd.s32 24, %v862_v23  ;;  %v123_v6 = vsub.s32 1, %v862_v23  ;;  %p749_p5 = por %p748_p4, %p747_p3 }
  0x2d   :  { %644 = vmatpush3.bf16.msra.mxu1 %v690_v16  ;;  %v205_v31 = vadd.s32 %v204_v28, %v200_v26  ;;  %v202_v34 = vmul.u32 2654435761, %v196_v29  ;;  %v572_v26 = vld [vmem:[%s918_s3] ss:$0 sm:$0xff] }
  0x2e   :  { %626 = vmatpush3.bf16.msra.mxu0 %v683_v7  ;;  %645 = vmatprep.subr.bf16.mxu1 %v691_v17  ;;  %v206_v32 = vadd.s32 %v204_v28, %v201_v27  ;;  %v203_v35 = vmul.u32 2654435761, %v197_v30  ;;  %p750_p6 = pnand %p749_p5, %p743_p2 }
  0x2f   :  { %627 = vmatprep.subr.bf16.mxu0 %v684_v9  ;;  %v871_v36 = vadd.s32 %v209_v33, %v205_v31  ;;  %v207_v38 = vadd.s32 %v204_v28, %v202_v34 }
  0x30   :  { %677 = vset.pattern.permute.xlu1 %v775_v5  ;;  %676 = vset.pattern.permute.xlu0 %v775_v5  ;;  %v873_v37 = vadd.s32 %v209_v33, %v206_v32  ;;  %v208_v39 = vadd.s32 %v204_v28, %v203_v35  ;;  %v65_v5 = vld [vmem:[%s917_s2] sm:$0xf] }
  0x31   :  { %110 = vperm.xlu1 %677, %v62_v4   ;;  %106 = vperm.xlu0 %676, %v61_v2   ;;  %v214_v40 = vadd.s32 608135816, %v871_v36  ;;  %v877_v42 = vadd.s32 %v209_v33, %v207_v38  ;;  %v124_v16 = vrot.slane %v65_v5, %v123_v6 }
  0x32   :  { %628 = vmatpush3.bf16.msra.mxu0 %v684_v9  ;;  %646 = vmatpush3.bf16.msra.mxu1 %v691_v17  ;;  %v215_v41 = vadd.s32 608135816, %v873_v37  ;;  %v879_v43 = vadd.s32 %v209_v33, %v208_v39  ;;  %v179_v17 = vsub.s32 3, %v862_v23 }
  0x33   :  { %629 = vmatprep.subr.bf16.mxu0 %v685_v10  ;;  %647 = vmatprep.subr.bf16.mxu1 %v692_v18  ;;  %v218_v46 = vshrl.u32 %v214_v40, 16  ;;  %v216_v48 = vadd.s32 608135816, %v877_v42 }
  0x34   :  { %v219_v47 = vshrl.u32 %v215_v41, 16  ;;  %v217_v49 = vadd.s32 608135816, %v879_v43  ;;  %v180_v31 = vrot.slane %v65_v5, %v179_v17 }
  0x35   :  { %114 = vperm.xlu1 %677, %v63_v1   ;;  %118 = vperm.xlu0 %676, %v64_v3   ;;  %v222_v52 = vxor.u32 %v218_v46, %v214_v40  ;;  %v220_v54 = vshrl.u32 %v216_v48, 16 }
  0x36   :  { %630 = vmatpush3.bf16.msra.mxu0 %v685_v10  ;;  %648 = vmatpush3.bf16.msra.mxu1 %v692_v18  ;;  %v223_v53 = vxor.u32 %v219_v47, %v215_v41  ;;  %v221_v55 = vshrl.u32 %v217_v49, 16  ;;  %v151_v10 = vsub.s32 2, %v862_v23 }
  0x37   :  { %631 = vmatprep.subr.bf16.mxu0 %v686_v12  ;;  %649 = vmatprep.subr.bf16.mxu1 %v693_v19  ;;  %v226_v58 = vmul.u32 2146121005, %v222_v52  ;;  %v224_v60 = vxor.u32 %v220_v54, %v216_v48 }
  0x38   :  { %v227_v59 = vmul.u32 2146121005, %v223_v53  ;;  %v225_v61 = vxor.u32 %v221_v55, %v217_v49 }
  0x39   :  { %678 = vset.pattern.permute.xlu1 %v776_v8  ;;  %679 = vset.pattern.permute.xlu0 %v776_v8  ;;  %v230_v0 = vshrl.u32 %v226_v58, 15 }
  0x3a   :  { %134 = vperm.xlu1 %678, %v61_v2   ;;  %138 = vperm.xlu0 %679, %v62_v4  }
  0x3b   :  { %632 = vmatpush3.bf16.msra.mxu0 %v686_v12  ;;  %650 = vmatpush3.bf16.msra.mxu1 %v693_v19  ;;  %v234_v7 = vxor.u32 %v230_v0, %v226_v58 }
  0x3c   :  { %633 = vmatprep.subr.bf16.mxu0 %v687_v13  ;;  %651 = vmatprep.subr.bf16.mxu1 %v694_v20 }
  0x3d   :  { %v238_v19 = vmul.u32 2221713035, %v234_v7 }
  0x3e   :  { %142 = vperm.xlu1 %678, %v63_v1   ;;  %680 = vset.pattern.permute.xlu0 %v777_v11 }
  0x3f   :  { %162 = vperm.xlu0 %680, %v61_v2   ;;  %634 = vmatpush3.bf16.msra.mxu0 %v687_v13  ;;  %v89_v2 = vsub.s32 0, %v862_v23  ;;  %v242_v34 = vshrl.u32 %v238_v19, 16 }
  0x40   :  { %635 = vmatprep.subr.bf16.mxu0 %v688_v14  ;;  %652 = vmatpush3.bf16.msra.mxu1 %v694_v20 }
  0x41   :  { %653 = vmatprep.subr.bf16.mxu1 %v695_v21  ;;  %v90_v9 = vrot.slane %v65_v5, %v89_v2  ;;  %v246_v54 = vxor.u32 %v242_v34, %v238_v19  ;;  %v697_v19 = vld [vmem:[#allocation7 + $0x38] sm:$0xff]  }
  0x42   :  { %146 = vperm.xlu1 %678, %v64_v3  }
  0x43   :  { %174 = vperm.xlu0 %680, %v64_v3   ;;  %636 = vmatpush3.bf16.msra.mxu0 %v688_v14  ;;  %v228_v3 = vmul.u32 2146121005, %v224_v60  ;;  %vm250_vm0 = vcmp.ge.u32.totalorder %v246_v54, 1288490188 }
  0x44   :  { %637 = vmatprep.subr.bf16.mxu0 %v689_v15  ;;  %654 = vmatpush3.bf16.msra.mxu1 %v695_v21  ;;  %v152_v21 = vrot.slane %v65_v5, %v151_v10 }
  0x45   :  { %v232_v13 = vshrl.u32 %v228_v3, 15 }
  0x46   :  { %681 = vset.pattern.permute.xlu1 %v777_v11 }
  0x47   :  { %166 = vperm.xlu1 %681, %v62_v4   ;;  %638 = vmatpush3.bf16.msra.mxu0 %v689_v15  ;;  %v229_v4 = vmul.u32 2146121005, %v225_v61  ;;  %v236_v24 = vxor.u32 %v232_v13, %v228_v3 }
  0x49   :  { %v233_v14 = vshrl.u32 %v229_v4, 15  ;;  %v240_v40 = vmul.u32 2221713035, %v236_v24  ;;  %v387_v24 = vadd.s32 729683222, %v879_v43 }
  0x4b   :  { %170 = vperm.xlu1 %681, %v63_v1   ;;  %v231_v1 = vshrl.u32 %v227_v59, 15  ;;  %v237_v25 = vxor.u32 %v233_v14, %v229_v4  ;;  %v244_v58 = vshrl.u32 %v240_v40, 16 }
  0x4d   :  { %v235_v8 = vxor.u32 %v231_v1, %v227_v59  ;;  %v241_v41 = vmul.u32 2221713035, %v237_v25 }
  0x4f   :  { %v239_v20 = vmul.u32 2221713035, %v235_v8  ;;  %v245_v59 = vshrl.u32 %v241_v41, 16 }
  0x51   :  { %v243_v23 = vshrl.u32 %v239_v20, 16  ;;  %v249_v6 = vxor.u32 %v245_v59, %v241_v41 }
  0x53   :  { %v247_v55 = vxor.u32 %v243_v23, %v239_v20  ;;  %vm253_vm4 = vcmp.ge.u32.totalorder %v249_v6, 1288490188  ;;  %v384_v20 = vadd.s32 729683222, %v871_v36 }
  0x55   :  { %vm251_vm1 = vcmp.ge.u32.totalorder %v247_v55, 1288490188  ;;  %v388_v25 = vshrl.u32 %v384_v20, 16 }
  0x56   :  { %vm582_vm2 = vmpackc.low %vm251_vm1, %vm250_vm0 }
  0xa7   :  { %v80_v44 = vpop.permute.xlu1 %79  ;;  %v70_v45 = vpop.permute.xlu0 %69 }
  0xa8   :  { %v91_v15 = vmul.f32 %v90_v9, %v70_v45  ;;  %v93_v45 = vmul.f32 %v90_v9, %v80_v44 }
  0xaa   :  { %v101_v28 = vadd.f32 %v572_v26, %v91_v15  ;;  %v103_v60 = vadd.f32 %v572_v26, %v93_v45 }
  0xab   :  { %v85_v50 = vpop.permute.xlu1 %84  ;;  %v75_v51 = vpop.permute.xlu0 %74 }
  0xac   :  { %v92_v18 = vmul.f32 %v90_v9, %v75_v51  ;;  %v94_v29 = vmul.f32 %v90_v9, %v85_v50 }
  0xae   :  { %v102_v32 = vadd.f32 %v572_v26, %v92_v18  ;;  %v104_v47 = vadd.f32 %v572_v26, %v94_v29  ;;  %v696_v18 = vld [vmem:[#allocation7 + $0x30] sm:$0xff]   ;;  %v392_v29 = vxor.u32 %v388_v25, %v384_v20 }
  0xaf   :  { %655 = vmatprep.subr.bf16.mxu1 %v696_v18 }
  0xb0   :  { %v111_v56 = vpop.permute.xlu1 %110  ;;  %v107_v57 = vpop.permute.xlu0 %106  ;;  %656 = vmatpush3.bf16.msra.mxu1 %v696_v18 }
  0xb1   :  { %v125_v30 = vmul.f32 %v124_v16, %v107_v57  ;;  %v126_v33 = vmul.f32 %v124_v16, %v111_v56  ;;  %657 = vmatprep.subr.bf16.mxu1 %v697_v19 }
  0xb3   :  { %v129_v48 = vadd.f32 %v125_v30, %v101_v28  ;;  %v130_v52 = vadd.f32 %v126_v33, %v102_v32  ;;  %v391_v28 = vshrl.u32 %v387_v24, 16  ;;  %v396_v33 = vmul.u32 2146121005, %v392_v29 }
  0xb4   :  { %v115_v62 = vpop.permute.xlu1 %114  ;;  %v119_v63 = vpop.permute.xlu0 %118  ;;  %658 = vmatpush3.bf16.msra.mxu1 %v697_v19 }
  0xb5   :  { %v128_v35 = vmul.f32 %v124_v16, %v119_v63  ;;  %v127_v53 = vmul.f32 %v124_v16, %v115_v62  ;;  %v248_v62 = vxor.u32 %v244_v58, %v240_v40  ;;  %v395_v32 = vxor.u32 %v391_v28, %v387_v24 }
  0xb7   :  { %v132_v57 = vadd.f32 %v128_v35, %v104_v47  ;;  %v131_v4 = vadd.f32 %v127_v53, %v103_v60  ;;  %vm252_vm3 = vcmp.ge.u32.totalorder %v248_v62, 1288490188  ;;  %v399_v35 = vmul.u32 2146121005, %v395_v32 }
  0xb8   :  { %vm585_vm5 = vmpackc.low %vm253_vm4, %vm252_vm3 }
  0xb9   :  { %v135_v11 = vpop.permute.xlu1 %134  ;;  %v139_v12 = vpop.permute.xlu0 %138 }
  0xba   :  { %v153_v38 = vmul.f32 %v152_v21, %v135_v11  ;;  %v154_v46 = vmul.f32 %v152_v21, %v139_v12 }
  0xbc   :  { %v157_v56 = vadd.f32 %v153_v38, %v129_v48  ;;  %v158_v61 = vadd.f32 %v154_v46, %v130_v52  ;;  %v400_v38 = vshrl.u32 %v396_v33, 15 }
  0xbd   :  { %v143_v22 = vpop.permute.xlu1 %142 }
  0xbe   :  { %v163_v27 = vpop.permute.xlu0 %162  ;;  %v155_v63 = vmul.f32 %v152_v21, %v143_v22  ;;  %v386_v22 = vadd.s32 729683222, %v877_v42  ;;  %v404_v40 = vxor.u32 %v400_v38, %v396_v33 }
  0xbf   :  { %v181_v49 = vmul.f32 %v180_v31, %v163_v27 }
  0xc0   :  { %v159_v7 = vadd.f32 %v155_v63, %v131_v4  ;;  %v390_v27 = vshrl.u32 %v386_v22, 16  ;;  %v408_v45 = vmul.u32 2221713035, %v404_v40 }
  0xc1   :  { %v147_v39 = vpop.permute.xlu1 %146  ;;  %v185_v1 = vadd.f32 %v181_v49, %v157_v56 }
  0xc2   :  { %v156_v51 = vmul.f32 %v152_v21, %v147_v39  ;;  %v175_v50 = vpop.permute.xlu0 %174  ;;  %v385_v21 = vadd.s32 729683222, %v873_v37  ;;  %v403_v37 = vshrl.u32 %v399_v35, 15  ;;  %v412_v49 = vshrl.u32 %v408_v45, 16 }
  0xc3   :  { %v184_v2 = vmul.f32 %v180_v31, %v175_v50  ;;  %v189_v9 = vmax.f32 %v185_v1, 0.0  ;;  %v573_v50 = vld [vmem:[%s920_s5] ss:$0 sm:$0xff] }
  0xc4   :  { %v160_v44 = vadd.f32 %v156_v51, %v132_v57  ;;  %v389_v26 = vshrl.u32 %v385_v21, 16  ;;  %v407_v43 = vxor.u32 %v403_v37, %v399_v35  ;;  %v416_v55 = vxor.u32 %v412_v49, %v408_v45 }
  0xc6   :  { %v167_v0 = vpop.permute.xlu1 %166  ;;  %v188_v10 = vadd.f32 %v184_v2, %v160_v44  ;;  %v393_v30 = vxor.u32 %v389_v26, %v385_v21  ;;  %v411_v48 = vmul.u32 2221713035, %v407_v43  ;;  %vm420_vm6 = vcmp.ge.u32.totalorder %v416_v55, 1288490188 }
  0xc7   :  { %v182_v3 = vmul.f32 %v180_v31, %v167_v0 }
  0xc8   :  { %v192_v15 = vmax.f32 %v188_v10, 0.0  ;;  %v397_v34 = vmul.u32 2146121005, %v393_v30  ;;  %v415_v53 = vshrl.u32 %v411_v48, 16 }
  0xc9   :  { %v186_v5 = vadd.f32 %v182_v3, %v158_v61 }
  0xca   :  { %v171_v8 = vpop.permute.xlu1 %170  ;;  %v401_v36 = vshrl.u32 %v397_v34, 15  ;;  %v419_v60 = vxor.u32 %v415_v53, %v411_v48 }
  0xcb   :  { %v190_v11 = vmax.f32 %v186_v5, 0.0  ;;  %v183_v12 = vmul.f32 %v180_v31, %v171_v8  ;;  %v394_v31 = vxor.u32 %v390_v27, %v386_v22 }
  0xcc   :  { %v405_v42 = vxor.u32 %v401_v36, %v397_v34  ;;  %vm423_vm9 = vcmp.ge.u32.totalorder %v419_v60, 1288490188 }
  0xcd   :  { %v187_v13 = vadd.f32 %v183_v12, %v159_v7  ;;  %v583_v14 = vpack.c.bf16 %v190_v11, %v189_v9  ;;  %v398_v23 = vmul.u32 2146121005, %v394_v31  ;;  %v588_v7 = vld [vmem:[%s922_s7] ss:$0 sm:$0xff] }
  0xce   :  { %v409_v46 = vmul.u32 2221713035, %v405_v42 }
  0xcf   :  { %v191_v16 = vmax.f32 %v187_v13, 0.0  ;;  %639 = vmatprep.mubr.msk.bf16.mxu0 %vm582_vm2, %v583_v14  ;;  %v402_v39 = vshrl.u32 %v398_v23, 15 }
  0xd0   :  { %v413_v51 = vshrl.u32 %v409_v46, 16 }
  0xd1   :  { %v586_v17 = vpack.c.bf16 %v192_v15, %v191_v16  ;;  %v406_v41 = vxor.u32 %v402_v39, %v398_v23 }
  0xd2   :  { %v417_v57 = vxor.u32 %v413_v51, %v409_v46 }
  0xd3   :  { %640 = vmatmul.mubr.msk.bf16.vlgmr.msra.gmra.mrb[0].mxu0 %vm585_vm5, %v586_v17  ;;  %v410_v47 = vmul.u32 2221713035, %v406_v41 }
  0xd4   :  { %vm421_vm7 = vcmp.ge.u32.totalorder %v417_v57, 1288490188 }
  0xd5   :  { %v414_v52 = vshrl.u32 %v410_v47, 16  ;;  %vm597_vm10 = vmpackc.low %vm421_vm7, %vm420_vm6 }
  0xd7   :  { %v418_v59 = vxor.u32 %v414_v52, %v410_v47 }
  0xd9   :  { %vm422_vm8 = vcmp.ge.u32.totalorder %v418_v59, 1288490188 }
  0xda   :  { %vm600_vm11 = vmpackc.low %vm423_vm9, %vm422_vm8 }
 0x1a6   :  { %v641_v54 = vpop.f32.mrb[0].mxu0 }
 0x1a7   :  { %v374_v56 = vadd.f32 %v641_v54, %v573_v50  ;;  %v365_v58 = vpop.f32.mrb[1].mxu0 }
 0x1a8   :  { %v366_v61 = vadd.f32 %v573_v50, %v365_v58  ;;  %v642_v63 = vpop.f32.mrb[2].mxu0 }
 0x1a9   :  { %v377_v0 = vadd.f32 %v642_v63, %v573_v50  ;;  %v368_v1 = vpop.f32.mrb[3].mxu0  ;;  %v382_v2 = vmax.f32 %v374_v56, 0.0 }
 0x1aa   :  { %v369_v44 = vadd.f32 %v573_v50, %v368_v1  ;;  %v380_v4 = vmax.f32 %v366_v61, 0.0 }
 0x1ab   :  { %v383_v3 = vmax.f32 %v377_v0, 0.0 }
 0x1ac   :  { %v381_v5 = vmax.f32 %v369_v44, 0.0 }
 0x1ad   :  { %v601_v62 = vpack.c.bf16 %v383_v3, %v382_v2 }
 0x1ae   :  { %v598_v6 = vpack.c.bf16 %v381_v5, %v380_v4 }
 0x1b0   :  { %659 = vmatprep.mubr.msk.bf16.mxu1 %vm597_vm10, %v598_v6 }
 0x1b1   :  { %660 = vmatmul.mubr.msk.bf16.vlgmr.msra.gmra.mrb[0].mxu1 %vm600_vm11, %v601_v62 }
 0x284   :  { %v661_v8 = vpop.f32.mrb[0].mxu1 }
 0x285   :  { %v544_v9 = vadd.f32 %v661_v8, %v588_v7  ;;  %v535_v10 = vpop.f32.mrb[1].mxu1 }
 0x286   :  { %v536_v11 = vadd.f32 %v588_v7, %v535_v10  ;;  %v662_v12 = vpop.f32.mrb[2].mxu1 }
 0x287   :  { %552 = vst [vmem:[#allocation9 + $0x10] sm:$0xff] %v544_v9  ;;  %v547_v13 = vadd.f32 %v662_v12, %v588_v7  ;;  %v538_v14 = vpop.f32.mrb[3].mxu1 }
 0x288   :  { %550 = vst [vmem:[#allocation9] sm:$0xff] %v536_v11  ;;  %v539_v15 = vadd.f32 %v588_v7, %v538_v14 }
 0x289   :  { %553 = vst [vmem:[#allocation9 + $0x18] sm:$0xff] %v547_v13 }
 0x28a   :  { %551 = vst [vmem:[#allocation9 + $0x8] sm:$0xff] %v539_v15 }
 0x28b   :  { %753 = shalt.err (!%p750_p6)
}
 0x28c   :  { %s754_s24 = scalar_lea.hbm %s923_s8, 512 }
 0x28d   :  { %p755_p7 = scmp.ne.s32.totalorder %s923_s8, %s754_s24  ;;  %p758_p8 = scmp.lt.u32.totalorder %s754_s24, %s923_s8 }
 0x28f   :  { %p760_p9 = pnand %p758_p8, %p755_p7 }
 0x291   :  { %763 = shalt.err (!%p760_p9)
}
 0x292   :  { %s779_s4 = smov 128   ;;  %s780_s28 = smov 8  }
 0x293   :  { %565 = dma.vmem_to_hbm [thread:$0]  %s560_s21, 512, %s923_s8, [#allocation6], %s779_s4, %s779_s4, %s780_s28  }
 0x294   :  { %768 = dma.done.wait [#allocation6], 512  }
 0x295   :  { %769 = vsyncadd [#allocation6], 4294966784 }
 0x296   :  { %569 = vsyncpa [#allocation5], 1 }
 0x297   :  { %570 = vsyncpa [#allocation8], 1 }
 0x298   :  { %571 = vsyncpa [#allocation6], 1 }

</bundles_post_ra>
